<compile_context>
chip_gen: v7x
topology: tpu7x:2x2x1
jax: 0.10.0
libtpu: 0.0.40
codegen_flags: <defaults>
</compile_context>

<pallas_src>
import functools

import jax
import jax.numpy as jnp
from jax.experimental import pallas as pl
from jax.experimental.pallas import tpu as pltpu

_LANE = 1024                    # lane-dense minor dim (multiple of 128)
_FAST_ROWS = 256                # rows per block in fast path (256*1024*4B = 1 MiB)
_SPATIAL_BYTES = 512 * 1024     # target input-block size for the spatial path


def _lrn_pointwise_kernel(x_ref, o_ref, *, alpha, beta):
    # local_size == 1: purely elementwise.
    #   out = x / (alpha*x^2 + 1)^beta == x * exp(-beta * log(alpha*x^2 + 1))
    x = x_ref[...].astype(jnp.float32)
    scale = jnp.exp((-beta) * jnp.log(alpha * (x * x) + 1.0))
    o_ref[...] = (x * scale).astype(o_ref.dtype)


def _lrn_spatial_kernel(x_ref, o_ref, *, local_size, alpha, beta):
    # x_ref / o_ref: (TC, H, W) block of independent (n, c) slabs.
    x = x_ref[...].astype(jnp.float32)
    tc, h, w = x.shape
    x2 = x * x
    pad = (local_size - 1) // 2
    # Separable window sum with zero padding (count_include_pad=True AvgPool2d
    # semantics: always divide by local_size**2).  2*L adds instead of L^2.
    if pad > 0:
        zrow = jnp.zeros((tc, pad, w), jnp.float32)
        xp = jnp.concatenate([zrow, x2, zrow], axis=1)
    else:
        xp = x2
    acc = xp[:, 0:h, :]
    for d in range(1, local_size):
        acc = acc + xp[:, d:d + h, :]
    if pad > 0:
        zcol = jnp.zeros((tc, h, pad), jnp.float32)
        accp = jnp.concatenate([zcol, acc, zcol], axis=2)
    else:
        accp = acc
    acc2 = accp[:, :, 0:w]
    for d in range(1, local_size):
        acc2 = acc2 + accp[:, :, d:d + w]
    avg = acc2 * (1.0 / float(local_size * local_size))
    scale = jnp.exp((-beta) * jnp.log(alpha * avg + 1.0))
    o_ref[...] = (x * scale).astype(o_ref.dtype)


def lrn(x, *, local_size=1, alpha=1.0, beta=0.75, across_channels=False):
    """LRN forward matching the PyTorch module (ACROSS_CHANNELS=False path)."""
    if across_channels:
        # TODO(synk): ACROSS_CHANNELS=True (AvgPool3d over the channel axis) is not
        # exercised by the module defaults; only within-channel LRN is implemented.
        raise NotImplementedError("ACROSS_CHANNELS=True not implemented")

    N, C, H, W = x.shape
    alpha = float(alpha)
    beta = float(beta)
    itemsize = jnp.dtype(x.dtype).itemsize

    if local_size == 1:
        # ---- Elementwise fast path: lane-dense (rows, 1024) tiling. ----
        total = N * C * H * W
        rows = -(-total // _LANE)
        tr = min(rows, _FAST_ROWS)              # multiple of 8 or equal to full dim
        rows_p = -(-rows // tr) * tr
        flat = jnp.ravel(x)
        pad_amt = rows_p * _LANE - total
        if pad_amt:
            flat = jnp.concatenate([flat, jnp.zeros((pad_amt,), x.dtype)])
        x2d = flat.reshape(rows_p, _LANE)

        kernel = functools.partial(_lrn_pointwise_kernel, alpha=alpha, beta=beta)
        cost = pl.CostEstimate(
            flops=6 * total,
            transcendentals=2 * total,
            bytes_accessed=2 * total * itemsize,
        )
        out = pl.pallas_call(
            kernel,
            out_shape=jax.ShapeDtypeStruct((rows_p, _LANE), x.dtype),
            grid_spec=pltpu.PrefetchScalarGridSpec(
                num_scalar_prefetch=0,
                grid=(rows_p // tr,),
                in_specs=[pl.BlockSpec((tr, _LANE), lambda i: (i, 0))],
                out_specs=pl.BlockSpec((tr, _LANE), lambda i: (i, 0)),
            ),
            compiler_params=pltpu.CompilerParams(
                dimension_semantics=("parallel",),
                vmem_limit_bytes=32 * 1024 * 1024,
            ),
            cost_estimate=cost,
        )(x2d)
        return out.reshape(-1)[:total].reshape(N, C, H, W)

    if local_size % 2 == 0:
        # TODO(synk): even local_size changes the AvgPool2d output shape; the
        # original PyTorch module's x.div(div) would shape-mismatch too.
        raise NotImplementedError("even local_size > 1 not supported")

    # ---- Spatial pooling path (local_size > 1): block many (n, c) slabs. ----
    NC = N * C
    xf = x.reshape(NC, H, W)
    slab_bytes = H * W * itemsize
    tc = max(1, min(NC, _SPATIAL_BYTES // max(slab_bytes, 1)))
    nc_p = -(-NC // tc) * tc
    if nc_p != NC:
        xf = jnp.concatenate([xf, jnp.zeros((nc_p - NC, H, W), x.dtype)], axis=0)

    kernel = functools.partial(
        _lrn_spatial_kernel, local_size=local_size, alpha=alpha, beta=beta
    )
    out = pl.pallas_call(
        kernel,
        out_shape=jax.ShapeDtypeStruct((nc_p, H, W), x.dtype),
        grid_spec=pltpu.PrefetchScalarGridSpec(
            num_scalar_prefetch=0,
            grid=(nc_p // tc,),
            in_specs=[pl.BlockSpec((tc, H, W), lambda i: (i, 0, 0))],
            out_specs=pl.BlockSpec((tc, H, W), lambda i: (i, 0, 0)),
        ),
        compiler_params=pltpu.CompilerParams(
            dimension_semantics=("parallel",),
            vmem_limit_bytes=32 * 1024 * 1024,
        ),
    )(xf)
    return out[:NC].reshape(N, C, H, W)


def _lrn_reference(x, *, local_size=1, alpha=1.0, beta=0.75):
    # Pure-JAX reference of the PyTorch forward (within-channel case).
    xf = x.astype(jnp.float32)
    x2 = xf * xf
    pad = (local_size - 1) // 2
    if local_size == 1:
        avg = x2
    else:
        x2p = jnp.pad(x2, ((0, 0), (0, 0), (pad, pad), (pad, pad)))
        H, W = x.shape[2], x.shape[3]
        acc = jnp.zeros_like(x2)
        for dy in range(local_size):
            for dx in range(local_size):
                acc = acc + x2p[:, :, dy:dy + H, dx:dx + W]
        avg = acc / float(local_size * local_size)
    div = jnp.power(avg * alpha + 1.0, beta)
    return (xf / div).astype(x.dtype)


if __name__ == "__main__":
    key = jax.random.PRNGKey(0)
    # Small NCHW input consistent with the module's forward.
    x = jax.random.normal(key, (2, 4, 16, 16), dtype=jnp.float32)

    # Module defaults: local_size=1, alpha=1.0, beta=0.75, ACROSS_CHANNELS=False.
    y = lrn(x, local_size=1, alpha=1.0, beta=0.75)
    y = jax.block_until_ready(y)

    y_ref = _lrn_reference(x, local_size=1, alpha=1.0, beta=0.75)
    assert y.shape == x.shape and y.dtype == x.dtype
    assert jnp.allclose(y, y_ref, atol=1e-5, rtol=1e-5)

    print("KERNEL_OK")
</pallas_src>

<mosaic_0001>
module attributes {stable_mosaic.version = 11 : i64} {
  func.func @_lrn_pointwise_kernel(%arg0: i32, %arg1: memref<2x1024xf32, #tpu.memory_space<vmem>>, %arg2: memref<2x1024xf32, #tpu.memory_space<vmem>>) attributes {dimension_semantics = [#tpu.dimension_semantics<parallel>], iteration_bounds = array<i64: 1>, scalar_prefetch = 0 : i64, scratch_operands = 0 : i64, tpu.core_type = #tpu.core_type<tc>, window_params = [{transform_indices = @transform_0, window_bounds = array<i64: 2, 1024>}, {transform_indices = @transform_1, window_bounds = array<i64: 2, 1024>}]} {
    %c0 = arith.constant 0 : index
    %c0_0 = arith.constant 0 : index
    %0 = vector.load %arg1[%c0, %c0_0] : memref<2x1024xf32, #tpu.memory_space<vmem>>, vector<2x1024xf32>
    %1 = arith.mulf %0, %0 : vector<2x1024xf32>
    %cst = arith.constant 1.000000e+00 : f32
    %2 = vector.broadcast %cst : f32 to vector<2x1024xf32>
    %3 = arith.mulf %2, %1 : vector<2x1024xf32>
    %cst_1 = arith.constant 1.000000e+00 : f32
    %4 = vector.broadcast %cst_1 : f32 to vector<2x1024xf32>
    %5 = arith.addf %3, %4 : vector<2x1024xf32>
    %6 = math.log %5 : vector<2x1024xf32>
    %cst_2 = arith.constant -7.500000e-01 : f32
    %7 = vector.broadcast %cst_2 : f32 to vector<2x1024xf32>
    %8 = arith.mulf %7, %6 : vector<2x1024xf32>
    %9 = math.exp %8 : vector<2x1024xf32>
    %10 = arith.mulf %0, %9 : vector<2x1024xf32>
    %c0_3 = arith.constant 0 : index
    %c0_4 = arith.constant 0 : index
    %11 = vector.load %arg2[%c0_3, %c0_4] : memref<2x1024xf32, #tpu.memory_space<vmem>>, vector<2x1024xf32>
    tpu.vector_store %arg2[%c0_3, %c0_4], %10 {strides = array<i32>} : memref<2x1024xf32, #tpu.memory_space<vmem>>, vector<2x1024xf32>,
    return
  }
  func.func @transform_0(%arg0: i32) -> (i32, i32) {
    %c0_i32 = arith.constant 0 : i32
    %c0_i32_0 = arith.constant 0 : i32
    return %arg0, %c0_i32 : i32, i32
  }
  func.func @transform_1(%arg0: i32) -> (i32, i32) {
    %c0_i32 = arith.constant 0 : i32
    %c0_i32_0 = arith.constant 0 : i32
    return %arg0, %c0_i32 : i32, i32
  }
}

</mosaic_0001>

<bundles_post_ra>
// kernel: tpu_custom_call.1
= control target key start
LH: loop header
LB: loop body
LE: loop exit
PB: predicated region body
PF: predicated region fallthrough
CT: control target
= control target key end

     0   :  { %6 = vsyncpa [#allocation3], 0  ;;  %s150_s0 = inlined_call_operand.hbm [shape: f32[2,1024], index: 0, kind: input, shape index: {}]   ;;  %s151_s1 = inlined_call_operand.hbm [shape: f32[2,1024], index: 1, kind: output, shape index: {}]  }
   0x1   :  { %7 = vsyncpa [#allocation4], 0  ;;  %s114_s6 = smov [#allocation2]   ;;  %s66_s10 = scalar_lea.hbm %s150_s0, 256 }
   0x2   :  { %s14_s7 = sshll.u32 %s114_s6, 4  ;;  %p67_p0 = scmp.ne.s32.totalorder %s150_s0, %s66_s10  ;;  %s15_s7 = int_to_ptr.vmem [resolvable:$true] %s14_s7 }
   0x3   :  { %p70_p1 = scmp.lt.u32.totalorder %s66_s10, %s150_s0 }
   0x5   :  { %p72_p2 = pnand %p70_p1, %p67_p0 }
   0x7   :  { %75 = shalt.err (!%p72_p2)
}
   0x8   :  { %s76_s15 = scalar_lea.vmem %s15_s7, 256  ;;  %p81_p4 = scmp.lt.s32.totalorder %s15_s7, %s15_s7 }
   0x9   :  { %p77_p3 = scmp.ne.s32.totalorder %s15_s7, %s76_s15  ;;  %p82_p5 = scmp.lt.s32.totalorder %s76_s15, %s76_s15 }
   0xb   :  { %p83_p6 = por %p82_p5, %p81_p4 }
   0xd   :  { %p84_p7 = pnand %p83_p6, %p77_p3 }
   0xf   :  { %87 = shalt.err (!%p84_p7)
}
  0x10   :  { %17 = dma.hbm_to_vmem [thread:$0]  %s150_s0, 256, %s15_s7, [#allocation3]  }
  0x11   :  { %110 = dma.done.wait [#allocation3], 256  }
  0x12   :  { %111 = vsyncadd [#allocation3], 4294967040  ;;  %v21_v0 = vld [vmem:[#allocation2] sm:$0xff]  ;;  %v22_v1 = vld [vmem:[#allocation2 + $0x8] sm:$0xff]  ;;  %s115_s0 = smov [#allocation5]  }
  0x13   :  { %v23_v2 = vmul.f32 %v21_v0, %v21_v0  ;;  %v24_v3 = vmul.f32 %v22_v1, %v22_v1  ;;  %s47_s18 = sshll.u32 %s115_s0, 4  ;;  %s48_s18 = int_to_ptr.vmem [resolvable:$true] %s47_s18 }
  0x14   :  { %s88_s19 = scalar_lea.vmem %s48_s18, 256  ;;  %p93_p9 = scmp.lt.s32.totalorder %s48_s18, %s48_s18 }
  0x15   :  { %v25_v4 = vadd.f32 1.0, %v23_v2  ;;  %v26_v5 = vadd.f32 1.0, %v24_v3  ;;  %p89_p8 = scmp.ne.s32.totalorder %s48_s18, %s88_s19  ;;  %p94_p10 = scmp.lt.s32.totalorder %s88_s19, %s88_s19 }
  0x17   :  { %58 = vlog2.f32 %v25_v4  ;;  %p95_p11 = por %p94_p10, %p93_p9 }
  0x18   :  { %60 = vlog2.f32 %v26_v5 }
  0x19   :  { %p96_p12 = pnand %p95_p11, %p89_p8 }
  0x21   :  { %v59_v6 = vpop.eup %58 }
  0x22   :  { %v61_v7 = vpop.eup %60  ;;  %v28_v8 = vmul.f32 0.6931472, %v59_v6 }
  0x23   :  { %v30_v9 = vmul.f32 0.6931472, %v61_v7 }
  0x24   :  { %v31_v10 = vmul.f32 -0.75, %v28_v8 }
  0x25   :  { %v32_v11 = vmul.f32 -0.75, %v30_v9 }
  0x26   :  { %v33_v12 = vmul.f32 1.442695, %v31_v10 }
  0x27   :  { %v35_v13 = vmul.f32 1.442695, %v32_v11 }
  0x28   :  { %62 = vpow2.f32 %v33_v12 }
  0x29   :  { %64 = vpow2.f32 %v35_v13 }
  0x32   :  { %v63_v14 = vpop.eup %62 }
  0x33   :  { %v65_v15 = vpop.eup %64  ;;  %v37_v16 = vmul.f32 %v63_v14, %v21_v0 }
  0x34   :  { %v38_v17 = vmul.f32 %v65_v15, %v22_v1 }
  0x35   :  { %39 = vst [vmem:[#allocation5] sm:$0xff] %v37_v16 }
  0x36   :  { %40 = vst [vmem:[#allocation5 + $0x8] sm:$0xff] %v38_v17 }
  0x37   :  { %99 = shalt.err (!%p96_p12)
}
  0x38   :  { %s100_s22 = scalar_lea.hbm %s151_s1, 256 }
  0x39   :  { %p101_p13 = scmp.ne.s32.totalorder %s151_s1, %s100_s22  ;;  %p104_p0 = scmp.lt.u32.totalorder %s100_s22, %s151_s1 }
  0x3b   :  { %p106_p1 = pnand %p104_p0, %p101_p13 }
  0x3d   :  { %109 = shalt.err (!%p106_p1)
}
  0x3e   :  { %50 = dma.vmem_to_hbm [thread:$0]  %s48_s18, 256, %s151_s1, [#allocation4]  }
  0x3f   :  { %112 = dma.done.wait [#allocation4], 256  }
  0x40   :  { %113 = vsyncadd [#allocation4], 4294967040 }
  0x41   :  { %54 = vsyncpa [#allocation3], 1 }
  0x42   :  { %55 = vsyncpa [#allocation4], 1 }

</bundles_post_ra>
